<compile_context>
chip_gen: v6e
topology: v6e:2x2x1
jax: 0.10.0
libtpu: 0.0.40
codegen_flags: <defaults>
</compile_context>

<pallas_src>
import functools

import jax
import jax.numpy as jnp
from jax.experimental import pallas as pl
from jax.experimental.pallas import tpu as pltpu

_K_IN = 88   # layer-1 input features
_H = 64      # hidden width


def _mlp_kernel(x_ref, w1_ref, b1_ref, w2_ref, b2_ref, w3_ref, b3_ref, o_ref):
    # x_ref : (TILE_B, 88) float32  -- raw input rows, cast to MXU dtype here
    # w1_ref: (88, 64) compute dtype ; w2_ref: (64, 64) compute dtype
    # b1_ref, b2_ref: (1, 64) f32 ; w3_ref: (1, 64) f32 ; b3_ref: (1, 1) f32
    # o_ref : (1, TILE_B) f32 lane-dense output row
    cdt = w1_ref.dtype

    # Layer 1: in-kernel cast (no wrapper pad/cast HBM round trip), MXU matmul
    # with unaligned K=88 (Mosaic zero-masks the contraction padding),
    # f32 accumulation, bias + ReLU in f32.
    x = x_ref[...].astype(cdt)
    h1 = jnp.dot(x, w1_ref[...], preferred_element_type=jnp.float32)
    h1 = jnp.maximum(h1 + b1_ref[...], 0.0)

    # Layer 2: MXU matmul, f32 accumulation.
    h2 = jnp.dot(h1.astype(cdt), w2_ref[...], preferred_element_type=jnp.float32)
    h2 = jnp.maximum(h2 + b2_ref[...], 0.0)

    # Layer 3 (64 -> 1): VPU multiply + cross-lane reduce instead of an N=1
    # MXU matmul; store lane-dense (1, TILE_B) instead of a (TILE_B, 1) column.
    y = jnp.sum(h2 * w3_ref[...], axis=-1)                    # (TILE_B,) f32
    o_ref[...] = (y[None, :] + b3_ref[...]).astype(o_ref.dtype)


def prepare_params(params, compute_dtype=jnp.bfloat16):
    """One-time parameter prep (hoisted out of the per-call path).

    params uses PyTorch shapes: w1 (64,88), b1 (64,), w2 (64,64), b2 (64,),
    w3 (1,64), b3 (1,).  Returns (in,out)-transposed, dtype-cast tensors.
    """
    w1 = params["w1"].T.astype(compute_dtype)                 # (88, 64)
    w2 = params["w2"].T.astype(compute_dtype)                 # (64, 64)
    b1 = params["b1"][None, :].astype(jnp.float32)            # (1, 64)
    b2 = params["b2"][None, :].astype(jnp.float32)            # (1, 64)
    w3 = params["w3"].astype(jnp.float32)                     # (1, 64)
    b3 = params["b3"][None, :].astype(jnp.float32)            # (1, 1)
    return {"w1": w1, "b1": b1, "w2": w2, "b2": b2, "w3": w3, "b3": b3}


def _round_up(n, m):
    return ((n + m - 1) // m) * m


def _choose_tile(B, tile_b):
    """Pick the batch tile: big enough to amortize grid-step overhead, but
    always >= 2 blocks when B >= 256 so both v7x TensorCores get work."""
    if B < 256:
        return B                                   # single full-extent block
    cap = max(128, (tile_b // 128) * 128)          # multiple of 128 (lane-dense out)
    two_way = max(128, _round_up(pl.cdiv(B, 2), 128))
    return min(cap, two_way)


def net_forward(x, prepped, *, tile_b=2048):
    """Forward pass of Net. x: (B, 88) float32. Returns (B, 1) float32."""
    B, K = x.shape
    assert K == _K_IN, K

    tb = _choose_tile(B, tile_b)
    grid = (pl.cdiv(B, tb),)

    def resident(a):
        return pl.BlockSpec(a.shape, lambda i: (0,) * a.ndim)

    w_bytes = sum(int(prepped[k].size) * prepped[k].dtype.itemsize
                  for k in ("w1", "b1", "w2", "b2", "w3", "b3"))
    cdt_size = prepped["w1"].dtype.itemsize

    # Explicit VMEM budget: x double buffer + output rows + resident params
    # (double-buffered by default) + compiler scratch for the intermediates.
    vmem_est = (
        2 * tb * _K_IN * x.dtype.itemsize          # x stream, double-buffered
        + 2 * tb * 4                               # (1, tb) f32 output rows
        + 2 * w_bytes                              # resident weights / biases
        + tb * (_K_IN * cdt_size                   # x cast to compute dtype
                + 2 * _H * 4                       # h1, h2 in f32
                + _H * cdt_size                    # h1 cast
                + _H * 4)                          # layer-3 product
    )
    vmem_limit = min(2 * int(vmem_est) + (4 << 20), 64 << 20)

    cost = pl.CostEstimate(
        flops=2 * B * (_K_IN * _H + _H * _H + _H),
        transcendentals=0,
        bytes_accessed=B * _K_IN * x.dtype.itemsize + w_bytes + B * 4,
    )

    out = pl.pallas_call(
        _mlp_kernel,
        out_shape=jax.ShapeDtypeStruct((1, B), jnp.float32),
        grid=grid,
        in_specs=[
            pl.BlockSpec((tb, _K_IN), lambda i: (i, 0)),      # x: tiled on batch
            resident(prepped["w1"]), resident(prepped["b1"]),  # weights/biases stay
            resident(prepped["w2"]), resident(prepped["b2"]),  # VMEM-resident over
            resident(prepped["w3"]), resident(prepped["b3"]),  # the whole grid
        ],
        out_specs=pl.BlockSpec((1, tb), lambda i: (0, i)),     # lane-dense output
        compiler_params=pltpu.CompilerParams(
            dimension_semantics=("parallel",),                 # shard batch tiles
            vmem_limit_bytes=vmem_limit,                       # explicit budget
        ),
        cost_estimate=cost,
    )(x, prepped["w1"], prepped["b1"], prepped["w2"], prepped["b2"],
      prepped["w3"], prepped["b3"])

    # (1, B) lane-dense kernel output -> (B, 1) like the PyTorch module.
    return out.reshape(B, 1)


def init_params(key):
    """Deterministic init matching nn.Linear (uniform +-1/sqrt(fan_in))."""
    ks = jax.random.split(key, 6)

    def lin(kw, kb, out_f, in_f):
        bound = 1.0 / jnp.sqrt(in_f)
        w = jax.random.uniform(kw, (out_f, in_f), jnp.float32, -bound, bound)
        b = jax.random.uniform(kb, (out_f,), jnp.float32, -bound, bound)
        return w, b

    w1, b1 = lin(ks[0], ks[1], 64, 88)
    w2, b2 = lin(ks[2], ks[3], 64, 64)
    w3, b3 = lin(ks[4], ks[5], 1, 64)
    return {"w1": w1, "b1": b1, "w2": w2, "b2": b2, "w3": w3, "b3": b3}


def _reference(x, p):
    dot = functools.partial(jnp.dot, precision=jax.lax.Precision.HIGHEST)
    h1 = jnp.maximum(dot(x, p["w1"].T) + p["b1"], 0.0)
    h2 = jnp.maximum(dot(h1, p["w2"].T) + p["b2"], 0.0)
    return dot(h2, p["w3"].T) + p["b3"]


if __name__ == "__main__":
    key = jax.random.PRNGKey(0)
    k_x, k_p, k_x2 = jax.random.split(key, 3)
    params = init_params(k_p)

    # 1) Small-shape correctness check on the f32 compute path (single block).
    B = 8
    x = jax.random.normal(k_x, (B, 88), dtype=jnp.float32)
    out_f32 = jax.block_until_ready(
        net_forward(x, prepare_params(params, compute_dtype=jnp.float32)))
    ref = _reference(x, params)
    assert out_f32.shape == (B, 1), out_f32.shape
    assert jnp.allclose(out_f32, ref, atol=1e-3, rtol=1e-3), \
        float(jnp.max(jnp.abs(out_f32 - ref)))

    # 2) bf16 fast path on a ragged multi-tile batch: B=300 -> tile 256 ->
    #    2 grid blocks ("parallel" axis), partial last x block and partial
    #    lane-dense output block both masked by Pallas.
    B2 = 300
    x2 = jax.random.normal(k_x2, (B2, 88), dtype=jnp.float32)
    out_bf16 = jax.block_until_ready(
        net_forward(x2, prepare_params(params, compute_dtype=jnp.bfloat16)))
    ref2 = _reference(x2, params)
    assert out_bf16.shape == (B2, 1), out_bf16.shape
    # bf16 MXU feeds with f32 accumulation: ~1e-2-level agreement expected.
    assert jnp.allclose(out_bf16, ref2, atol=5e-2, rtol=5e-2), \
        float(jnp.max(jnp.abs(out_bf16 - ref2)))

    print("KERNEL_OK")
</pallas_src>

<mosaic_0001>
module attributes {stable_mosaic.version = 11 : i64} {
  func.func @_mlp_kernel(%arg0: i32, %arg1: memref<8x88xf32, #tpu.memory_space<vmem>>, %arg2: memref<88x64xf32, #tpu.memory_space<vmem>>, %arg3: memref<1x64xf32, #tpu.memory_space<vmem>>, %arg4: memref<64x64xf32, #tpu.memory_space<vmem>>, %arg5: memref<1x64xf32, #tpu.memory_space<vmem>>, %arg6: memref<1x64xf32, #tpu.memory_space<vmem>>, %arg7: memref<1x1xf32, #tpu.memory_space<vmem>>, %arg8: memref<1x8xf32, #tpu.memory_space<vmem>>) attributes {dimension_semantics = [#tpu.dimension_semantics<parallel>], iteration_bounds = array<i64: 1>, scalar_prefetch = 0 : i64, scratch_operands = 0 : i64, tpu.core_type = #tpu.core_type<tc>, window_params = [{transform_indices = @transform_0, window_bounds = array<i64: 8, 88>}, {pipeline_mode = #tpu.pipeline_mode<synchronous>, transform_indices = @transform_1, window_bounds = array<i64: 88, 64>}, {pipeline_mode = #tpu.pipeline_mode<synchronous>, transform_indices = @transform_2, window_bounds = array<i64: 1, 64>}, {pipeline_mode = #tpu.pipeline_mode<synchronous>, transform_indices = @transform_3, window_bounds = array<i64: 64, 64>}, {pipeline_mode = #tpu.pipeline_mode<synchronous>, transform_indices = @transform_4, window_bounds = array<i64: 1, 64>}, {pipeline_mode = #tpu.pipeline_mode<synchronous>, transform_indices = @transform_5, window_bounds = array<i64: 1, 64>}, {pipeline_mode = #tpu.pipeline_mode<synchronous>, transform_indices = @transform_6, window_bounds = array<i64: 1, 1>}, {transform_indices = @transform_7, window_bounds = array<i64: 1, 8>}]} {
    %c0 = arith.constant 0 : index
    %c0_0 = arith.constant 0 : index
    %0 = vector.load %arg1[%c0, %c0_0] : memref<8x88xf32, #tpu.memory_space<vmem>>, vector<8x88xf32>
    %c0_1 = arith.constant 0 : index
    %c0_2 = arith.constant 0 : index
    %1 = vector.load %arg2[%c0_1, %c0_2] : memref<88x64xf32, #tpu.memory_space<vmem>>, vector<88x64xf32>
    %cst = arith.constant dense<0.000000e+00> : vector<8x64xf32>
    %2 = tpu.matmul %0, %1, %cst {dimension_numbers = #tpu.dot_dimension_numbers<[1], [0], [0], [1], [0, 0, 1, 1], [], []>} : vector<8x88xf32>, vector<88x64xf32>, vector<8x64xf32> -> vector<8x64xf32>
    %c0_3 = arith.constant 0 : index
    %c0_4 = arith.constant 0 : index
    %3 = vector.load %arg3[%c0_3, %c0_4] : memref<1x64xf32, #tpu.memory_space<vmem>>, vector<1x64xf32>
    %4 = vector.broadcast %3 : vector<1x64xf32> to vector<8x64xf32>
    %5 = arith.addf %2, %4 : vector<8x64xf32>
    %cst_5 = arith.constant 0.000000e+00 : f32
    %6 = vector.broadcast %cst_5 : f32 to vector<8x64xf32>
    %7 = arith.maximumf %5, %6 : vector<8x64xf32>
    %c0_6 = arith.constant 0 : index
    %c0_7 = arith.constant 0 : index
    %8 = vector.load %arg4[%c0_6, %c0_7] : memref<64x64xf32, #tpu.memory_space<vmem>>, vector<64x64xf32>
    %cst_8 = arith.constant dense<0.000000e+00> : vector<8x64xf32>
    %9 = tpu.matmul %7, %8, %cst_8 {dimension_numbers = #tpu.dot_dimension_numbers<[1], [0], [0], [1], [0, 0, 1, 1], [], []>} : vector<8x64xf32>, vector<64x64xf32>, vector<8x64xf32> -> vector<8x64xf32>
    %c0_9 = arith.constant 0 : index
    %c0_10 = arith.constant 0 : index
    %10 = vector.load %arg5[%c0_9, %c0_10] : memref<1x64xf32, #tpu.memory_space<vmem>>, vector<1x64xf32>
    %11 = vector.broadcast %10 : vector<1x64xf32> to vector<8x64xf32>
    %12 = arith.addf %9, %11 : vector<8x64xf32>
    %cst_11 = arith.constant 0.000000e+00 : f32
    %13 = vector.broadcast %cst_11 : f32 to vector<8x64xf32>
    %14 = arith.maximumf %12, %13 : vector<8x64xf32>
    %c0_12 = arith.constant 0 : index
    %c0_13 = arith.constant 0 : index
    %15 = vector.load %arg6[%c0_12, %c0_13] : memref<1x64xf32, #tpu.memory_space<vmem>>, vector<1x64xf32>
    %16 = vector.broadcast %15 : vector<1x64xf32> to vector<8x64xf32>
    %17 = arith.mulf %14, %16 : vector<8x64xf32>
    %cst_14 = arith.constant dense<0.000000e+00> : vector<8xf32>
    %18 = vector.multi_reduction <add>, %17, %cst_14 [1] : vector<8x64xf32> to vector<8xf32>
    %19 = vector.shape_cast %18 : vector<8xf32> to vector<1x8xf32>
    %c0_15 = arith.constant 0 : index
    %c0_16 = arith.constant 0 : index
    %20 = vector.load %arg7[%c0_15, %c0_16] : memref<1x1xf32, #tpu.memory_space<vmem>>, vector<1x1xf32>
    %21 = vector.broadcast %20 : vector<1x1xf32> to vector<1x8xf32>
    %22 = arith.addf %19, %21 : vector<1x8xf32>
    %c0_17 = arith.constant 0 : index
    %c0_18 = arith.constant 0 : index
    %23 = vector.load %arg8[%c0_17, %c0_18] : memref<1x8xf32, #tpu.memory_space<vmem>>, vector<1x8xf32>
    tpu.vector_store %arg8[%c0_17, %c0_18], %22 {strides = array<i32>} : memref<1x8xf32, #tpu.memory_space<vmem>>, vector<1x8xf32>,
    return
  }
  func.func @transform_0(%arg0: i32) -> (i32, i32) {
    %c0_i32 = arith.constant 0 : i32
    %c0_i32_0 = arith.constant 0 : i32
    return %arg0, %c0_i32 : i32, i32
  }
  func.func @transform_1(%arg0: i32) -> (i32, i32) {
    %c0_i32 = arith.constant 0 : i32
    %c0_i32_0 = arith.constant 0 : i32
    %c0_i32_1 = arith.constant 0 : i32
    return %c0_i32, %c0_i32_0 : i32, i32
  }
  func.func @transform_2(%arg0: i32) -> (i32, i32) {
    %c0_i32 = arith.constant 0 : i32
    %c0_i32_0 = arith.constant 0 : i32
    %c0_i32_1 = arith.constant 0 : i32
    return %c0_i32, %c0_i32_0 : i32, i32
  }
  func.func @transform_3(%arg0: i32) -> (i32, i32) {
    %c0_i32 = arith.constant 0 : i32
    %c0_i32_0 = arith.constant 0 : i32
    %c0_i32_1 = arith.constant 0 : i32
    return %c0_i32, %c0_i32_0 : i32, i32
  }
  func.func @transform_4(%arg0: i32) -> (i32, i32) {
    %c0_i32 = arith.constant 0 : i32
    %c0_i32_0 = arith.constant 0 : i32
    %c0_i32_1 = arith.constant 0 : i32
    return %c0_i32, %c0_i32_0 : i32, i32
  }
  func.func @transform_5(%arg0: i32) -> (i32, i32) {
    %c0_i32 = arith.constant 0 : i32
    %c0_i32_0 = arith.constant 0 : i32
    %c0_i32_1 = arith.constant 0 : i32
    return %c0_i32, %c0_i32_0 : i32, i32
  }
  func.func @transform_6(%arg0: i32) -> (i32, i32) {
    %c0_i32 = arith.constant 0 : i32
    %c0_i32_0 = arith.constant 0 : i32
    %c0_i32_1 = arith.constant 0 : i32
    return %c0_i32, %c0_i32_0 : i32, i32
  }
  func.func @transform_7(%arg0: i32) -> (i32, i32) {
    %c0_i32 = arith.constant 0 : i32
    %c0_i32_0 = arith.constant 0 : i32
    return %c0_i32, %arg0 : i32, i32
  }
}

</mosaic_0001>

<bundles_post_ra>
// kernel: tpu_custom_call.1
= control target key start
LH: loop header
LB: loop body
LE: loop exit
PB: predicated region body
PF: predicated region fallthrough
CT: control target
= control target key end

     0   :  { %s475_s0 = inlined_call_operand.vmem [shape: f32[8,88], index: 0, kind: input, shape index: {}]   ;;  %s476_s1 = inlined_call_operand.vmem [shape: f32[88,64], index: 1, kind: input, shape index: {}]   ;;  %s477_s2 = inlined_call_operand.vmem [shape: f32[1,64], index: 2, kind: input, shape index: {}]   ;;  %s478_s3 = inlined_call_operand.vmem [shape: f32[64,64], index: 3, kind: input, shape index: {}]   ;;  %s479_s4 = inlined_call_operand.vmem [shape: f32[1,64], index: 4, kind: input, shape index: {}]   ;;  %s480_s5 = inlined_call_operand.vmem [shape: f32[1,64], index: 5, kind: input, shape index: {}]   ;;  %s481_s6 = inlined_call_operand.<no memory space> [shape: f32[1,1], index: 6, kind: input, shape index: {}]   ;;  %s482_s7 = inlined_call_operand.hbm [shape: f32[1,8], index: 7, kind: output, shape index: {}]  }
   0x1   :  { %v12_v0 = vstv %s481_s6 }
   0x2   :  { %13 = vst [vmem:[#allocation2] sm:$0x1] %v12_v0 }
   0x3   :  { %v40_v1 = vld [vmem:[%s476_s1 + $0x50] sm:$0xff]  ;;  %v356_v2 = vmov 0.0   ;;  %v39_v3 = vld [vmem:[%s476_s1 + $0x48] sm:$0xff]  ;;  %vm357_vm0 = vmmov 0   ;;  %v38_v4 = vld [vmem:[%s476_s1 + $0x40] sm:$0xff] }
   0x4   :  { %285 = vmatprep.subr.mxu0 %v356_v2  ;;  %307 = vmatprep.mubr.msk.f32.mxu0 %vm357_vm0, %v356_v2  ;;  %v130_v5 = vld [vmem:[%s478_s3 + $0x38] sm:$0xff]  ;;  %v129_v6 = vld [vmem:[%s478_s3 + $0x30] sm:$0xff]  ;;  %v128_v8 = vld [vmem:[%s478_s3 + $0x28] sm:$0xff] }
   0x5   :  { %286 = vmatpush3.msra.mxu0 %v40_v1  ;;  %310 = vmatprep.subr.mxu1 %v356_v2  ;;  %v37_v7 = vld [vmem:[%s476_s1 + $0x38] sm:$0xff] }
   0x6   :  { %287 = vmatprep.subr.mxu0 %v356_v2  ;;  %326 = vmatprep.mubr.msk.f32.mxu1 %vm357_vm0, %v356_v2 }
   0x7   :  { %288 = vmatpush3.msra.mxu0 %v39_v3  ;;  %311 = vmatpush3.msra.mxu1 %v130_v5 }
   0x8   :  { %289 = vmatprep.subr.mxu0 %v356_v2  ;;  %312 = vmatprep.subr.mxu1 %v356_v2 }
   0x9   :  { %290 = vmatpush3.msra.mxu0 %v38_v4 }
   0xa   :  { %14 = vsyncpa [#allocation4], 0  ;;  %291 = vmatprep.subr.mxu0 %v356_v2  ;;  %v36_v9 = vld [vmem:[%s476_s1 + $0x30] sm:$0xff]  ;;  %313 = vmatpush3.msra.mxu1 %v129_v6  ;;  %v127_v10 = vld [vmem:[%s478_s3 + $0x20] sm:$0xff]  ;;  %vm48_vm1 = vcmask 719872   ;;  %vm138_vm2 = vcmask 523264   ;;  %v230_v37 = vlaneseq }
   0xb   :  { %292 = vmatpush3.msra.mxu0 %v37_v7  ;;  %314 = vmatprep.subr.mxu1 %v356_v2  ;;  %v35_v11 = vld [vmem:[%s476_s1 + $0x28] sm:$0xff]  ;;  %v126_v12 = vld [vmem:[%s478_s3 + $0x18] sm:$0xff]  ;;  %v34_v13 = vld [vmem:[%s476_s1 + $0x20] sm:$0xff]  ;;  %v358_v27 = vmov 0   ;;  %vm243_vm3 = vcmask 57344  }
   0xc   :  { %293 = vmatprep.subr.mxu0 %v356_v2  ;;  %315 = vmatpush3.msra.mxu1 %v128_v8  ;;  %v33_v14 = vld [vmem:[%s476_s1 + $0x18] sm:$0xff]  ;;  %v32_v15 = vld [vmem:[%s476_s1 + $0x10] sm:$0xff]  ;;  %v31_v16 = vld [vmem:[%s476_s1 + $0x8] sm:$0xff]  ;;  %v231_v38 = vshrl.u32 %v230_v37, 7  ;;  %v237_v41 = vand.u32 127, %v230_v37 }
   0xd   :  { %294 = vmatpush3.msra.mxu0 %v36_v9  ;;  %316 = vmatprep.subr.mxu1 %v356_v2  ;;  %v30_v17 = vld [vmem:[%s476_s1] sm:$0xff]  ;;  %v125_v19 = vld [vmem:[%s478_s3 + $0x10] sm:$0xff]  ;;  %v124_v20 = vld [vmem:[%s478_s3 + $0x8] sm:$0xff] }
   0xe   :  { %295 = vmatprep.subr.mxu0 %v356_v2  ;;  %317 = vmatpush3.msra.mxu1 %v127_v10  ;;  %v29_v18 = vld [vmem:[%s475_s0] sm:$0xff]  ;;  %v232_v40 = vsub.s32 0, %v231_v38  ;;  %v240_v44 = vsub.s32 %v237_v41, %v231_v38 }
   0xf   :  { %296 = vmatpush3.msra.mxu0 %v35_v11  ;;  %318 = vmatprep.subr.mxu1 %v356_v2  ;;  %v123_v21 = vld [vmem:[%s478_s3] sm:$0xff] }
  0x10   :  { %297 = vmatprep.subr.mxu0 %v356_v2  ;;  %319 = vmatpush3.msra.mxu1 %v126_v12  ;;  %v259_v22 = vld [vmem:[%s477_s2] ss:$0 sm:$0xff]  ;;  %s359_s2 = smov [#allocation3]  }
  0x11   :  { %298 = vmatpush3.msra.mxu0 %v34_v13  ;;  %320 = vmatprep.subr.mxu1 %v356_v2  ;;  %v261_v28 = vld [vmem:[%s479_s4] ss:$0 sm:$0xff]  ;;  %s251_s4 = sshll.u32 %s359_s2, 4  ;;  %s252_s4 = int_to_ptr.vmem [resolvable:$true] %s251_s4 }
  0x12   :  { %299 = vmatprep.subr.mxu0 %v356_v2  ;;  %321 = vmatpush3.msra.mxu1 %v125_v19  ;;  %v263_v32 = vld [vmem:[%s480_s5] ss:$0 sm:$0xff]  ;;  %s334_s5 = scalar_lea.vmem %s252_s4, 16  ;;  %s338_s21 = scalar_lea.vmem %s252_s4, 32 }
  0x13   :  { %300 = vmatpush3.msra.mxu0 %v33_v14  ;;  %322 = vmatprep.subr.mxu1 %v356_v2  ;;  %v224_v36 = vld [vmem:[#allocation2] sm:$0x1]  ;;  %p335_p0 = scmp.ne.s32.totalorder %s252_s4, %s334_s5  ;;  %p339_p1 = scmp.lt.s32.totalorder %s252_s4, %s252_s4 }
  0x14   :  { %301 = vmatprep.subr.mxu0 %v356_v2  ;;  %323 = vmatpush3.msra.mxu1 %v124_v20  ;;  %p340_p2 = scmp.lt.s32.totalorder %s338_s21, %s334_s5 }
  0x15   :  { %302 = vmatpush3.msra.mxu0 %v32_v15  ;;  %324 = vmatprep.subr.mxu1 %v356_v2 }
  0x16   :  { %303 = vmatprep.subr.mxu0 %v356_v2  ;;  %325 = vmatpush3.msra.mxu1 %v123_v21  ;;  %p341_p3 = por %p340_p2, %p339_p1 }
  0x17   :  { %304 = vmatpush3.msra.mxu0 %v31_v16  ;;  %333 = vset.pattern.permute.xlu0 %v358_v27 }
  0x18   :  { %305 = vmatprep.subr.mxu0 %v356_v2  ;;  %p342_p4 = pnand %p341_p3, %p335_p0 }
  0x19   :  { %306 = vmatpush3.msra.mxu0 %v30_v17 }
  0x1a   :  { %308 = vmatmul.mubr.msk.f32.vlgmr.msra.gmra.mxu0 %vm48_vm1, %v29_v18 }
  0xda   :  { %v118_v23 = vpop.f32.mrf.mxu0 }
  0xdb   :  { %v119_v24 = vadd.f32 %v259_v22, %v118_v23 }
  0xdc   :  { %v309_v25 = vpop.f32.mrf.mxu0 }
  0xdd   :  { %v122_v26 = vmax.f32 %v119_v24, 0.0 }
  0xdf   :  { %327 = vmatmul.mubr.msk.f32.vlgmr.msra.gmra.mxu1 %vm138_vm2, %v122_v26 }
 0x19f   :  { %v208_v29 = vpop.f32.mrf.mxu1 }
 0x1a0   :  { %v209_v30 = vadd.f32 %v261_v28, %v208_v29 }
 0x1a1   :  { %v328_v31 = vpop.f32.mrf.mxu1 }
 0x1a2   :  { %v212_v33 = vmax.f32 %v209_v30, 0.0 }
 0x1a4   :  { %v220_v34 = vmul.f32 %v263_v32, %v212_v33 }
 0x1a6   :  { %v221_v35 = vsel %vm138_vm2, %v220_v34, 0.0 }
 0x1a7   :  { %222 = vadd.xlane.f32.xlu0 %v221_v35 }
 0x1bd   :  { %227 = vperm.xlu0 %333, %v224_v36  }
 0x230   :  { %v223_v39 = vpop.xlane.xlu0 %222 }
 0x238   :  { %v228_v42 = vpop.permute.xlu0 %227 }
 0x239   :  { %v233_v43 = vrot.slane %v228_v42, %v232_v40 }
 0x23b   :  { %v234_v45 = vadd.f32 %v233_v43, %v223_v39 }
 0x23d   :  { %v241_v46 = vrot.slane %v234_v45, %v240_v44 }
 0x23f   :  { %244 = vst.msk [vmem:[#allocation3] sm:$0x1] %vm243_vm3, %v241_v46 }
 0x240   :  { %345 = shalt.err (!%p342_p4)
}
 0x241   :  { %254 = dma.vmem_to_hbm [thread:$0]  %s252_s4, 16, %s482_s7, [#allocation4]  }
 0x242   :  { %354 = dma.done.wait [#allocation4], 16  }
 0x243   :  { %355 = vsyncadd [#allocation4], 4294967280 }
 0x244   :  { %258 = vsyncpa [#allocation4], 1 }

</bundles_post_ra>
